<compile_context>
chip_gen: v6e
topology: v6e:2x2x1
jax: 0.10.0
libtpu: 0.0.40
codegen_flags: <defaults>
</compile_context>

<pallas_src>
import numpy as np
import jax
import jax.numpy as jnp
from jax.experimental import pallas as pl
from jax.experimental.pallas import tpu as pltpu


_SQRT_2_OVER_PI = 0.7978845608028654


def _gelu_tanh(x):
    # TODO(synk): PyTorch nn.GELU() default is the exact erf formulation; the
    # tanh approximation (max abs diff ~1e-3) is used because tanh maps cleanly
    # onto the TPU EUP. The in-script reference uses the same formula.
    return 0.5 * x * (1.0 + jnp.tanh(_SQRT_2_OVER_PI * (x + 0.044715 * x * x * x)))


# ---------------------------------------------------------------------------
# Pallas kernel: one grid step = one (batch, HW-tile) block, fully fused MLP.
#   x_ref : (1, cin, thw)  f32     o_ref : (1, cout, thw) f32
#   w1_ref: (hidden, cin)  bf16    b1_ref: (hidden, 1)    f32
#   w2_ref: (cout, hidden) bf16    b2_ref: (cout, 1)      f32
# ---------------------------------------------------------------------------
def mlp_kernel(x_ref, w1_ref, b1_ref, w2_ref, b2_ref, o_ref):
    x = x_ref[0].astype(jnp.bfloat16)                                  # (cin, thw)
    h = jnp.dot(w1_ref[...], x, preferred_element_type=jnp.float32)    # (hidden, thw)
    h = h + b1_ref[...]                                                 # f32 bias
    h = _gelu_tanh(h)                                                    # f32 elementwise
    o = jnp.dot(w2_ref[...], h.astype(jnp.bfloat16),
                preferred_element_type=jnp.float32)                     # (cout, thw)
    o = o + b2_ref[...]
    o_ref[0] = o.astype(o_ref.dtype)


def _pick_hw_tile(hw_pad, max_tile):
    """Largest multiple of 128 <= max_tile dividing hw_pad (hw_pad % 128 == 0)."""
    best, t = 128, 128
    while t <= min(hw_pad, max_tile):
        if hw_pad % t == 0:
            best = t
        t += 128
    return best


# ---------------------------------------------------------------------------
# Wrapper: NCHW in/out (matches the PyTorch module). Only free reshapes on the
# wrapper side; both matmuls + GELU fused in a single Pallas kernel.
# ---------------------------------------------------------------------------
def mlp_pallas(x_nchw, params, *, max_thw=1024):
    bs, cin, hgt, wid = x_nchw.shape
    hidden = params['w1'].shape[0]
    cout = params['w2'].shape[0]
    hw = hgt * wid

    xr = jnp.reshape(x_nchw, (bs, cin, hw))          # free, stays contiguous
    hw_pad = int(128 * pl.cdiv(hw, 128))
    if hw_pad != hw:
        # TODO(synk): mask the ragged HW tail in-kernel to avoid this HBM copy.
        xr = jnp.pad(xr, ((0, 0), (0, 0), (0, hw_pad - hw)))
    thw = _pick_hw_tile(hw_pad, max_thw)
    grid = (bs, hw_pad // thw)

    # 1x1 conv weights (out, in, 1, 1) -> matmul matrices, pre-cast to bf16
    w1m = params['w1'][:, :, 0, 0].astype(jnp.bfloat16)    # (hidden, cin)
    w2m = params['w2'][:, :, 0, 0].astype(jnp.bfloat16)    # (cout, hidden)
    b1r = params['b1'].reshape(hidden, 1).astype(jnp.float32)
    b2r = params['b2'].reshape(cout, 1).astype(jnp.float32)

    # VMEM budget: double-buffered x/out blocks, single-buffered bf16 weights,
    # f32 hidden intermediate (+ bf16 copy slack), 2x headroom.
    x_blk = cin * thw * 4
    o_blk = cout * thw * 4
    w_bytes = (hidden * cin + cout * hidden) * 2 + (hidden + cout) * 4
    h_bytes = 2 * hidden * thw * 4
    need = 2 * (x_blk + o_blk) + w_bytes + h_bytes
    vmem_limit = int(min(max(2 * need, 32 << 20), 60 << 20))

    const_spec = lambda shape: pl.BlockSpec(
        shape, lambda b, j: (0, 0), pipeline_mode=pl.Buffered(buffer_count=1))

    out = pl.pallas_call(
        mlp_kernel,
        out_shape=jax.ShapeDtypeStruct((bs, cout, hw_pad), jnp.float32),
        grid=grid,
        in_specs=[
            pl.BlockSpec((1, cin, thw), lambda b, j: (b, 0, j)),
            const_spec((hidden, cin)),
            const_spec((hidden, 1)),
            const_spec((cout, hidden)),
            const_spec((cout, 1)),
        ],
        out_specs=pl.BlockSpec((1, cout, thw), lambda b, j: (b, 0, j)),
        compiler_params=pltpu.CompilerParams(
            dimension_semantics=("parallel", "parallel"),
            vmem_limit_bytes=vmem_limit),
    )(xr, w1m, b1r, w2m, b2r)

    out = out[:, :, :hw].reshape(bs, cout, hgt, wid)   # free reshape back to NCHW
    return out


# ---------------------------------------------------------------------------
# Deterministic synthetic parameters (Conv2d weight layout: (out, in, 1, 1)).
# ---------------------------------------------------------------------------
def make_params(key, cin, hidden, cout):
    k1, k2, k3, k4 = jax.random.split(key, 4)
    return {
        'w1': jax.random.normal(k1, (hidden, cin, 1, 1), jnp.float32) * 0.2,
        'b1': jax.random.normal(k2, (hidden,), jnp.float32) * 0.1,
        'w2': jax.random.normal(k3, (cout, hidden, 1, 1), jnp.float32) * 0.2,
        'b2': jax.random.normal(k4, (cout,), jnp.float32) * 0.1,
    }


# ---------------------------------------------------------------------------
# Pure-JAX f32 reference mirroring the PyTorch module (1x1 convs, dropout p=0).
# ---------------------------------------------------------------------------
def ref_forward(x, p):
    h = jnp.einsum('bchw,oc->bohw', x, p['w1'][:, :, 0, 0]) + p['b1'].reshape(1, -1, 1, 1)
    h = _gelu_tanh(h)
    o = jnp.einsum('bchw,oc->bohw', h, p['w2'][:, :, 0, 0]) + p['b2'].reshape(1, -1, 1, 1)
    return o


if __name__ == "__main__":
    key = jax.random.PRNGKey(0)
    kx, kp = jax.random.split(key)
    bs, cin, hgt, wid, hidden = 2, 4, 16, 16, 32     # outputFeature defaults to inputFeature
    x = jax.random.normal(kx, (bs, cin, hgt, wid), jnp.float32)
    params = make_params(kp, cin, hidden, cin)

    y = jax.block_until_ready(mlp_pallas(x, params))
    y_ref = jax.block_until_ready(ref_forward(x, params))

    assert y.shape == (bs, cin, hgt, wid)
    # bf16 MXU inputs with f32 accumulation -> loosen tolerance vs. the f32 reference.
    np.testing.assert_allclose(np.asarray(y), np.asarray(y_ref), rtol=2e-2, atol=5e-2)
    print("KERNEL_OK")
</pallas_src>

<mosaic_0001>
module attributes {stable_mosaic.version = 11 : i64} {
  func.func @mlp_kernel(%arg0: i32, %arg1: i32, %arg2: memref<1x4x256xf32, #tpu.memory_space<vmem>>, %arg3: memref<32x4xbf16, #tpu.memory_space<vmem>>, %arg4: memref<32x1xf32, #tpu.memory_space<vmem>>, %arg5: memref<4x32xbf16, #tpu.memory_space<vmem>>, %arg6: memref<4x1xf32, #tpu.memory_space<vmem>>, %arg7: memref<1x4x256xf32, #tpu.memory_space<vmem>>) attributes {dimension_semantics = [#tpu.dimension_semantics<parallel>, #tpu.dimension_semantics<parallel>], iteration_bounds = array<i64: 2, 1>, scalar_prefetch = 0 : i64, scratch_operands = 0 : i64, tpu.core_type = #tpu.core_type<tc>, window_params = [{transform_indices = @transform_0, window_bounds = array<i64: 1, 4, 256>}, {pipeline_mode = #tpu.pipeline_mode<synchronous>, transform_indices = @transform_1, window_bounds = array<i64: 32, 4>}, {pipeline_mode = #tpu.pipeline_mode<synchronous>, transform_indices = @transform_2, window_bounds = array<i64: 32, 1>}, {pipeline_mode = #tpu.pipeline_mode<synchronous>, transform_indices = @transform_3, window_bounds = array<i64: 4, 32>}, {pipeline_mode = #tpu.pipeline_mode<synchronous>, transform_indices = @transform_4, window_bounds = array<i64: 4, 1>}, {transform_indices = @transform_5, window_bounds = array<i64: 1, 4, 256>}]} {
    %c0 = arith.constant 0 : index
    %c0_0 = arith.constant 0 : index
    %c0_1 = arith.constant 0 : index
    %0 = vector.load %arg2[%c0, %c0_0, %c0_1] : memref<1x4x256xf32, #tpu.memory_space<vmem>>, vector<1x4x256xf32>
    %1 = vector.shape_cast %0 : vector<1x4x256xf32> to vector<4x256xf32>
    %2 = arith.truncf %1 : vector<4x256xf32> to vector<4x256xbf16>
    %c0_2 = arith.constant 0 : index
    %c0_3 = arith.constant 0 : index
    %3 = vector.load %arg3[%c0_2, %c0_3] : memref<32x4xbf16, #tpu.memory_space<vmem>>, vector<32x4xbf16>
    %cst = arith.constant dense<0.000000e+00> : vector<32x256xf32>
    %4 = tpu.matmul %3, %2, %cst {dimension_numbers = #tpu.dot_dimension_numbers<[1], [0], [0], [1], [0, 0, 1, 1], [], []>} : vector<32x4xbf16>, vector<4x256xbf16>, vector<32x256xf32> -> vector<32x256xf32>
    %c0_4 = arith.constant 0 : index
    %c0_5 = arith.constant 0 : index
    %5 = vector.load %arg4[%c0_4, %c0_5] : memref<32x1xf32, #tpu.memory_space<vmem>>, vector<32x1xf32>
    %6 = vector.broadcast %5 : vector<32x1xf32> to vector<32x256xf32>
    %7 = arith.addf %4, %6 : vector<32x256xf32>
    %cst_6 = arith.constant 5.000000e-01 : f32
    %8 = vector.broadcast %cst_6 : f32 to vector<32x256xf32>
    %9 = arith.mulf %8, %7 : vector<32x256xf32>
    %cst_7 = arith.constant 4.471500e-02 : f32
    %10 = vector.broadcast %cst_7 : f32 to vector<32x256xf32>
    %11 = arith.mulf %10, %7 : vector<32x256xf32>
    %12 = arith.mulf %11, %7 : vector<32x256xf32>
    %13 = arith.mulf %12, %7 : vector<32x256xf32>
    %14 = arith.addf %7, %13 : vector<32x256xf32>
    %cst_8 = arith.constant 0.797884583 : f32
    %15 = vector.broadcast %cst_8 : f32 to vector<32x256xf32>
    %16 = arith.mulf %15, %14 : vector<32x256xf32>
    %17 = math.tanh %16 : vector<32x256xf32>
    %cst_9 = arith.constant 1.000000e+00 : f32
    %18 = vector.broadcast %cst_9 : f32 to vector<32x256xf32>
    %19 = arith.addf %18, %17 : vector<32x256xf32>
    %20 = arith.mulf %9, %19 : vector<32x256xf32>
    %c0_10 = arith.constant 0 : index
    %c0_11 = arith.constant 0 : index
    %21 = vector.load %arg5[%c0_10, %c0_11] : memref<4x32xbf16, #tpu.memory_space<vmem>>, vector<4x32xbf16>
    %22 = arith.truncf %20 : vector<32x256xf32> to vector<32x256xbf16>
    %cst_12 = arith.constant dense<0.000000e+00> : vector<4x256xf32>
    %23 = tpu.matmul %21, %22, %cst_12 {dimension_numbers = #tpu.dot_dimension_numbers<[1], [0], [0], [1], [0, 0, 1, 1], [], []>} : vector<4x32xbf16>, vector<32x256xbf16>, vector<4x256xf32> -> vector<4x256xf32>
    %c0_13 = arith.constant 0 : index
    %c0_14 = arith.constant 0 : index
    %24 = vector.load %arg6[%c0_13, %c0_14] : memref<4x1xf32, #tpu.memory_space<vmem>>, vector<4x1xf32>
    %25 = vector.broadcast %24 : vector<4x1xf32> to vector<4x256xf32>
    %26 = arith.addf %23, %25 : vector<4x256xf32>
    %c0_15 = arith.constant 0 : index
    %c0_16 = arith.constant 0 : index
    %c0_17 = arith.constant 0 : index
    %27 = vector.load %arg7[%c0_15, %c0_16, %c0_17] : memref<1x4x256xf32, #tpu.memory_space<vmem>>, vector<1x4x256xf32>
    %28 = vector.shape_cast %27 : vector<1x4x256xf32> to vector<4x256xf32>
    %29 = vector.shape_cast %26 : vector<4x256xf32> to vector<1x4x256xf32>
    tpu.vector_store %arg7[%c0_15, %c0_16, %c0_17], %29 {strides = array<i32>} : memref<1x4x256xf32, #tpu.memory_space<vmem>>, vector<1x4x256xf32>,
    return
  }
  func.func @transform_0(%arg0: i32, %arg1: i32) -> (i32, i32, i32) {
    %c0_i32 = arith.constant 0 : i32
    %c0_i32_0 = arith.constant 0 : i32
    return %arg0, %c0_i32, %arg1 : i32, i32, i32
  }
  func.func @transform_1(%arg0: i32, %arg1: i32) -> (i32, i32) {
    %c0_i32 = arith.constant 0 : i32
    %c0_i32_0 = arith.constant 0 : i32
    %c0_i32_1 = arith.constant 0 : i32
    return %c0_i32, %c0_i32_0 : i32, i32
  }
  func.func @transform_2(%arg0: i32, %arg1: i32) -> (i32, i32) {
    %c0_i32 = arith.constant 0 : i32
    %c0_i32_0 = arith.constant 0 : i32
    %c0_i32_1 = arith.constant 0 : i32
    return %c0_i32, %c0_i32_0 : i32, i32
  }
  func.func @transform_3(%arg0: i32, %arg1: i32) -> (i32, i32) {
    %c0_i32 = arith.constant 0 : i32
    %c0_i32_0 = arith.constant 0 : i32
    %c0_i32_1 = arith.constant 0 : i32
    return %c0_i32, %c0_i32_0 : i32, i32
  }
  func.func @transform_4(%arg0: i32, %arg1: i32) -> (i32, i32) {
    %c0_i32 = arith.constant 0 : i32
    %c0_i32_0 = arith.constant 0 : i32
    %c0_i32_1 = arith.constant 0 : i32
    return %c0_i32, %c0_i32_0 : i32, i32
  }
  func.func @transform_5(%arg0: i32, %arg1: i32) -> (i32, i32, i32) {
    %c0_i32 = arith.constant 0 : i32
    %c0_i32_0 = arith.constant 0 : i32
    return %arg0, %c0_i32, %arg1 : i32, i32, i32
  }
}

</mosaic_0001>

<bundles_post_ra>
// kernel: tpu_custom_call.1
= control target key start
LH: loop header
LB: loop body
LE: loop exit
PB: predicated region body
PF: predicated region fallthrough
CT: control target
= control target key end

     0   :  { %10 = vsyncpa [#allocation3], 0  ;;  %s964_s0 = inlined_call_operand.vmem [shape: f32[2,4,256], index: 0, kind: input, shape index: {}]   ;;  %s965_s1 = inlined_call_operand.vmem [shape: bf16[32,4], index: 1, kind: input, shape index: {}]   ;;  %s966_s2 = inlined_call_operand.vmem [shape: f32[32,1], index: 2, kind: input, shape index: {}]   ;;  %s967_s3 = inlined_call_operand.vmem [shape: bf16[4,32], index: 3, kind: input, shape index: {}]   ;;  %s968_s4 = inlined_call_operand.vmem [shape: f32[4,1], index: 4, kind: input, shape index: {}]   ;;  %s969_s5 = inlined_call_operand.hbm [shape: f32[2,4,256], index: 5, kind: output, shape index: {}]  }
   0x1   :  { %12 = vsyncpa [#allocation3 + $0x1], 0  ;;  %s800_s18 = smov 0   ;;  %s802_s19 = smov 0  }
   0x2   :  { %s804_s20 = smov 0   ;;  %s806_s21 = smov 0  }
   0x3   :  { %s808_s22 = smov 0   ;;  %s810_s23 = smov 0  }
   0x4 LB: > { %s592_s24 = sadd.s32 4294967295, %s766_s23   ;;  %s593_s25 = sadd.s32 4294967294, %s766_s23   ;;  %s766_s23 = sphi %s810_s23, %s18_s23   ;;  %s762_s22 = sphi %s808_s22, %s976_s22   ;;  %s758_s21 = sphi %s806_s21, %s975_s21   ;;  %s754_s20 = sphi %s804_s20, %s974_s20   ;;  %s750_s19 = sphi %s802_s19, %s973_s19   ;;  %s746_s18 = sphi %s800_s18, %s972_s18  }
   0x5   : > { %s30_s26 = sadd.s32 1, %s762_s22  ;;  %s151_s27 = sadd.s32 1, %s754_s20 }
   0x6   : > { %p32_p0 = scmp.ge.s32.totalorder %s30_s26, 2  ;;  %p161_p1 = scmp.ne.s32.totalorder %s754_s20, %s750_s19 }
   0x7   : > { %p162_p2 = scmp.eq.s32.totalorder %s592_s24, 1  ;;  %p167_p3 = scmp.ne.s32.totalorder %s750_s19, %s746_s18 }
   0x8   : > { %s978_s26 = smov (%p32_p0, %s30_s26), 0  ;;  %p168_p5 = scmp.eq.s32.totalorder %s593_s25, 1 }
   0x9   : > { %p840_p4 = por %p162_p2, %p161_p1  ;;  %s146_s29 = ssub.s32 %s762_s22, %s978_s26 }
   0xa   : > { %p596_p6 = scmp.ge.s32.totalorder %s766_s23, 1  ;;  %p149_p7 = scmp.eq.s32.totalorder %s146_s29, 0 }
   0xb   : > { %p847_p8 = por %p168_p5, %p167_p3  ;;  %p211_p9 = scmp.lt.s32.totalorder %s766_s23, 3 }
   0xc   : > { %s853_s6 = scalar_select %p149_p7, %s754_s20, %s151_s27  }
   0xd   : > { %p212_p10 = pnand %p596_p6, %p211_p9 }
   0xe   : > { %p244_p11 = scmp.lt.s32.totalorder (!%p212_p10), %s758_s21, 1  ;;  %s240_s13 = sand.u32 (!%p212_p10), 1, %s750_s19  }
   0xf   : > { %215 = sbr.rel (%p212_p10) target bundleno = 492 (0x1ec), region = 40  ;;  %s597_s14 = sshll.u32 (!%p212_p10), %s240_s13, 3 }
  0x10   : > { %s612_s15 = sshll.u32 (!%p212_p10), %s758_s21, 7  ;;  %s242_s16 = scalar_lea.vmem (!%p212_p10), [#allocation2], %s597_s14 }
  0x11   : > { %s516_s17 = sshll.u32 (!%p212_p10), %s242_s16, 4  ;;  %s924_s27 = scalar_lea.hbm (!%p212_p10), %s969_s5, %s612_s15  ;;  %s517_s17 = int_to_ptr.vmem [resolvable:$true] %s516_s17 }
  0x12   : > { %s500_s29 = scalar_lea.sflag (!%p212_p10), [#allocation3], %s240_s13 }
  0x14   : > { %v768_v0 = vmov 0   ;;  %s245_s7 = scalar_select %p244_p11, %s758_s21, 1  ;;  %v265_v1 = vld [vmem:[%s966_s2] sm:$0xff]  ;;  %v267_v2 = vld [vmem:[%s966_s2 + $0x10] sm:$0xff]  ;;  %v266_v3 = vld [vmem:[%s966_s2 + $0x8] sm:$0xff]  ;;  %vm306_vm0 = vcmask 1041408  }
  0x15   : > { %345 = vmatprep.mubr.bf16.mxu0 %v768_v0  ;;  %670 = vset.pattern.permute.xlu1 %v768_v0  ;;  %v268_v4 = vld [vmem:[%s966_s2 + $0x18] sm:$0xff]  ;;  %v443_v8 = vld [vmem:[%s968_s4] sm:$0xf]  ;;  %vm299_vm1 = vcmask 31744   ;;  %v673_v12 = vld [vmem:[%s965_s1 + $0x8] sm:$0xff]   ;;  %vm449_vm2 = vcmask 261120  }
  0x16   : > { %669 = vset.pattern.permute.xlu0 %v768_v0  ;;  %485 = vmatprep.mubr.bf16.mxu1 %v768_v0  ;;  %s611_s12 = sshll.u32 %s245_s7, 3  ;;  %v672_v11 = vld [vmem:[%s965_s1] sm:$0xff]   ;;  %s690_s7 = scalar_lea.vmem %s517_s17, 128 }
  0x17   : > { %271 = vperm.xlu1 %670, %v265_v1   ;;  %281 = vperm.xlu0 %669, %v267_v2   ;;  %s251_s25 = scalar_lea.vmem %s964_s0, %s611_s12  ;;  %p691_p12 = scmp.ne.s32.totalorder %s517_s17, %s690_s7 }
  0x18   : > { %v255_v5 = vld [vmem:[%s251_s25] sm:$0xff]  ;;  %s769_s21 = smov [#allocation2]  }
  0x19   : > { %v257_v6 = vcombine.high %v255_v5, %v255_v5  ;;  %v259_v7 = vpack.c.bf16 %v255_v5, %v255_v5  ;;  %p692_p13 = pnand %p691_p12, %p840_p4  ;;  %s694_s8 = sshll.u32 %s769_s21, 4  ;;  %s695_s8 = int_to_ptr.vmem [resolvable:$false] %s694_s8 }
  0x1a   : > { %s696_s9 = scalar_lea.vmem %s695_s8, 256  ;;  %p697_p1 = scmp.lt.s32.totalorder %s517_s17, %s695_s8 }
  0x1b   : > { %276 = vperm.xlu1 %670, %v266_v3   ;;  %286 = vperm.xlu0 %669, %v268_v4   ;;  %v260_v9 = vpack.c.bf16 %v257_v6, %v257_v6  ;;  %v308_v10 = vsel %vm306_vm0, %v259_v7, 0  ;;  %p693_p0 = pneg %p692_p13  ;;  %p698_p2 = scmp.lt.s32.totalorder %s696_s9, %s690_s7 }
  0x1d   : > { %602 = vmatprep.subr.msk.bf16.mxu0 %vm306_vm0, %v260_v9  ;;  %p699_p3 = por %p698_p2, %p697_p1 }
  0x1e   : > { %328 = vmatpush1.bf16.msra.mxu0 %v308_v10 }
  0x1f   : > { %446 = vperm.xlu0 %669, %v443_v8   ;;  %p700_p5 = pnand %p699_p3, %p693_p0 }
  0x21   : > { %603 = vmatmul.mubr.msk.bf16.vlgmr.msra.gmra.mxu0 %vm299_vm1, %v672_v11 }
  0x22   : > { %355 = vmatprep.mubr.bf16.mxu0 %v768_v0 }
  0x29   : > { %604 = vmatmul.mubr.msk.bf16.gmra.mxu0 %vm299_vm1, %v673_v12 }
  0x92   : > { %v272_v13 = vpop.permute.xlu1 %271  ;;  %v282_v22 = vpop.permute.xlu0 %281 }
  0x96   : > { %v277_v16 = vpop.permute.xlu1 %276  ;;  %v287_v38 = vpop.permute.xlu0 %286 }
  0xe1   : > { %v347_v14 = vpop.f32.mrf.mxu0 }
  0xe2   : > { %v883_v18 = vadd.f32 %v347_v14, %v272_v13 }
  0xe3   : > { %v349_v15 = vpop.f32.mrf.mxu0 }
  0xe4   : > { %v881_v17 = vadd.f32 %v349_v15, %v272_v13  ;;  %v374_v27 = vmul.f32 0.044715, %v883_v18 }
  0xe5   : > { %v351_v19 = vpop.f32.mrf.mxu0 }
  0xe6   : > { %v375_v20 = vmul.f32 0.044715, %v881_v17  ;;  %v886_v21 = vadd.f32 %v351_v19, %v277_v16  ;;  %v382_v37 = vmul.f32 %v374_v27, %v883_v18 }
  0xe7   : > { %v353_v23 = vpop.f32.mrf.mxu0 }
  0xe8   : > { %v383_v24 = vmul.f32 %v375_v20, %v881_v17  ;;  %v376_v25 = vmul.f32 0.044715, %v886_v21  ;;  %v890_v26 = vadd.f32 %v353_v23, %v277_v16  ;;  %v390_v50 = vmul.f32 %v382_v37, %v883_v18 }
  0xe9   : > { %v357_v28 = vpop.f32.mrf.mxu0 }
  0xea   : > { %v391_v29 = vmul.f32 %v383_v24, %v881_v17  ;;  %v377_v30 = vmul.f32 0.044715, %v890_v26  ;;  %v895_v31 = vadd.f32 %v357_v28, %v282_v22  ;;  %v384_v32 = vmul.f32 %v376_v25, %v886_v21 }
  0xeb   : > { %v359_v33 = vpop.f32.mrf.mxu0  ;;  %v398_v0 = vadd.f32 %v390_v50, %v883_v18  ;;  %v369_v24 = vmul.f32 0.5, %v890_v26 }
  0xec   : > { %v385_v34 = vmul.f32 %v377_v30, %v890_v26  ;;  %v378_v35 = vmul.f32 0.044715, %v895_v31  ;;  %v360_v36 = vadd.f32 %v359_v33, %v282_v22  ;;  %v399_v40 = vadd.f32 %v391_v29, %v881_v17 }
  0xed   : > { %v361_v39 = vpop.f32.mrf.mxu0  ;;  %v392_v45 = vmul.f32 %v384_v32, %v886_v21  ;;  %v406_v7 = vmul.f32 0.7978846, %v398_v0  ;;  %v370_v32 = vmul.f32 0.5, %v895_v31 }
  0xee   : > { %v393_v41 = vmul.f32 %v385_v34, %v890_v26  ;;  %v386_v42 = vmul.f32 %v378_v35, %v895_v31  ;;  %v379_v43 = vmul.f32 0.044715, %v360_v36  ;;  %v362_v44 = vadd.f32 %v361_v39, %v287_v38 }
  0xef   : > { %v363_v46 = vpop.f32.mrf.mxu0  ;;  %v407_v56 = vmul.f32 0.7978846, %v399_v40  ;;  %v400_v59 = vadd.f32 %v392_v45, %v886_v21  ;;  %v371_v27 = vmul.f32 0.5, %v360_v36 }
  0xf0   : > { %v380_v47 = vmul.f32 0.044715, %v362_v44  ;;  %v364_v48 = vadd.f32 %v363_v46, %v287_v38  ;;  %v387_v49 = vmul.f32 %v379_v43, %v360_v36  ;;  %v394_v51 = vmul.f32 %v386_v42, %v895_v31 }
  0xf1   : > { %v401_v52 = vadd.f32 %v393_v41, %v890_v26  ;;  %674 = vtanh.f32 %v407_v56  ;;  %v408_v4 = vmul.f32 0.7978846, %v400_v59  ;;  %v372_v22 = vmul.f32 0.5, %v362_v44 }
  0xf2   : > { %v388_v53 = vmul.f32 %v380_v47, %v362_v44  ;;  %v381_v54 = vmul.f32 0.044715, %v364_v48  ;;  %v395_v55 = vmul.f32 %v387_v49, %v360_v36  ;;  %v402_v57 = vadd.f32 %v394_v51, %v895_v31 }
  0xf3   : > { %v409_v58 = vmul.f32 0.7978846, %v401_v52  ;;  %v373_v28 = vmul.f32 0.5, %v364_v48  ;;  %v367_v38 = vmul.f32 0.5, %v881_v17  ;;  %v368_v41 = vmul.f32 0.5, %v886_v21 }
  0xf4   : > { %v389_v60 = vmul.f32 %v381_v54, %v364_v48  ;;  %v403_v61 = vadd.f32 %v395_v55, %v360_v36  ;;  %v396_v62 = vmul.f32 %v388_v53, %v362_v44  ;;  %v410_v63 = vmul.f32 0.7978846, %v402_v57  ;;  %v438_v17 = vld [vmem:[%s967_s3] sm:$0x3] }
  0xf5   : > { %676 = vtanh.f32 %v409_v58 }
  0xf6   : > { %v397_v1 = vmul.f32 %v389_v60, %v364_v48  ;;  %v411_v2 = vmul.f32 0.7978846, %v403_v61  ;;  %v404_v3 = vadd.f32 %v396_v62, %v362_v44  ;;  %v366_v44 = vmul.f32 0.5, %v883_v18 }
  0xf8   : > { %v405_v5 = vadd.f32 %v397_v1, %v364_v48  ;;  %678 = vtanh.f32 %v411_v2  ;;  %v412_v6 = vmul.f32 0.7978846, %v404_v3  ;;  %v447_v48 = vpop.permute.xlu0 %446 }
  0xf9   : > { %680 = vtanh.f32 %v410_v63 }
  0xfa   : > { %v413_v8 = vmul.f32 0.7978846, %v405_v5  ;;  %682 = vtanh.f32 %v412_v6 }
  0xfb   : > { %684 = vtanh.f32 %v408_v4 }
  0xfc   : > { %686 = vtanh.f32 %v413_v8 }
  0xfd   : > { %688 = vtanh.f32 %v406_v7 }
  0xfe   : > { %v675_v9 = vpop.eup %674 }
  0xff   : > { %v423_v30 = vadd.f32 1.0, %v675_v9 }
 0x101   : > { %v431_v43 = vmul.f32 %v423_v30, %v367_v38 }
 0x102   : > { %v677_v10 = vpop.eup %676 }
 0x103   : > { %v425_v19 = vadd.f32 1.0, %v677_v10 }
 0x105   : > { %v679_v11 = vpop.eup %678  ;;  %v433_v39 = vmul.f32 %v425_v19, %v369_v24 }
 0x106   : > { %v681_v12 = vpop.eup %680  ;;  %v427_v15 = vadd.f32 1.0, %v679_v11 }
 0x107   : > { %v683_v13 = vpop.eup %682  ;;  %v426_v23 = vadd.f32 1.0, %v681_v12  ;;  %v440_v31 = vpack.c.bf16 %v433_v39, %v431_v43 }
 0x108   : > { %v685_v14 = vpop.eup %684  ;;  %v428_v16 = vadd.f32 1.0, %v683_v13  ;;  %v435_v35 = vmul.f32 %v427_v15, %v371_v27 }
 0x109   : > { %v687_v20 = vpop.eup %686  ;;  %v424_v34 = vadd.f32 1.0, %v685_v14  ;;  %v434_v40 = vmul.f32 %v426_v23, %v370_v32 }
 0x10a   : > { %v689_v25 = vpop.eup %688  ;;  %v429_v29 = vadd.f32 1.0, %v687_v20  ;;  %v436_v33 = vmul.f32 %v428_v16, %v372_v22 }
 0x10b   : > { %v422_v42 = vadd.f32 1.0, %v689_v25  ;;  %v432_v45 = vmul.f32 %v424_v34, %v368_v41 }
 0x10c   : > { %v437_v37 = vmul.f32 %v429_v29, %v373_v28  ;;  %v441_v36 = vpack.c.bf16 %v436_v33, %v434_v40 }
 0x10d   : > { %v430_v46 = vmul.f32 %v422_v42, %v366_v44 }
 0x10e   : > { %v442_v26 = vpack.c.bf16 %v437_v37, %v435_v35 }
 0x10f   : > { %v439_v47 = vpack.c.bf16 %v432_v45, %v430_v46 }
 0x110   : > { %465 = vmatprep.subr.bf16.mxu1 %v442_v26 }
 0x111   : > { %466 = vmatpush1.bf16.msra.mxu1 %v441_v36 }
 0x112   : > { %467 = vmatprep.subr.bf16.mxu1 %v440_v31 }
 0x115   : > { %468 = vmatpush1.bf16.msra.mxu1 %v439_v47 }
 0x118   : > { %605 = vmatmul.mubr.msk.bf16.vlgmr.msra.gmra.mxu1 %vm449_vm2, %v438_v17 }
 0x1d8   : > { %v487_v21 = vpop.f32.mrf.mxu1 }
 0x1d9   : > { %v488_v49 = vadd.f32 %v487_v21, %v447_v48 }
 0x1da   : > { %v489_v18 = vpop.f32.mrf.mxu1 }
 0x1db   : > { %v490_v50 = vadd.f32 %v489_v18, %v447_v48 }
 0x1dc   : > { %v491_v51 = vpop.f32.mrf.mxu1 }
 0x1dd   : > { %v496_v52 = vcombine.low %v488_v49, %v490_v50 }
 0x1de   : > { %v492_v53 = vpop.f32.mrf.mxu1 }
 0x1df   : > { %498 = vst [vmem:[%s242_s16] sm:$0xff] %v496_v52 }
 0x1e0   : > { %703 = shalt.err (!%p700_p5)
}
 0x1e1   : > { %s704_s10 = scalar_lea.hbm %s924_s27, 128  ;;  %s708_s13 = scalar_lea.hbm %s969_s5, 256 }
 0x1e2   : > { %p705_p6 = scmp.ne.s32.totalorder %s924_s27, %s704_s10  ;;  %p709_p10 = scmp.lt.s32.totalorder %s924_s27, %s969_s5 }
 0x1e3   : > { %p710_p11 = scmp.lt.s32.totalorder %s708_s13, %s704_s10 }
 0x1e4   : > { %p706_p7 = pnand %p705_p6, %p840_p4 }
 0x1e5   : > { %p711_p12 = por %p710_p11, %p709_p10 }
 0x1e6   : > { %p707_p9 = pneg %p706_p7 }
 0x1e8   : > { %p712_p13 = pnand %p711_p12, %p707_p9 }
 0x1ea   : > { %715 = shalt.err (!%p712_p13)
}
 0x1eb   : > { %613 = dma.vmem_to_hbm [thread:$0]  (%p840_p4), %s517_s17, 128, %s924_s27, %s500_s29  }
 0x1ec PF: > { %p619_p0 = scmp.ge.s32.totalorder %s766_s23, 2  ;;  %s528_s16 = sand.u32 1, %s746_s18  }
 0x1ed   : > { %s529_s24 = scalar_lea.sflag [#allocation3], %s528_s16 }
 0x1ee   : > { %p616_p1 = pnand %p619_p0, %p847_p8 }
 0x1f0   : > { %p617_p2 = pneg %p616_p1 }
 0x1f2   : > { %741 = dma.done.wait (%p617_p2), %s529_s24, 128  }
 0x1f3   : > { %743 = vsyncadd (%p617_p2), %s529_s24, 4294967168  ;;  %s18_s23 = sadd.s32 1, %s766_s23   ;;  %s972_s18 = smov %s750_s19 }
 0x1f4   : > { %p15_p3 = scmp.ge.s32.totalorder %s18_s23, 4   ;;  %s973_s19 = smov %s754_s20 }
 0x1f5   : > { %s974_s20 = smov %s853_s6  ;;  %s975_s21 = smov %s762_s22 }
 0x1f6   : > { %s976_s22 = smov %s978_s26  ;;  %17 = sbr.rel (!%p15_p3) target bundleno = 4 (0x4), region = 75 }
 0x1fb   :  { %534 = vsyncpa [#allocation3], 1 }
 0x1fc   :  { %536 = vsyncpa [#allocation3 + $0x1], 1 }

</bundles_post_ra>
